<compile_context>
chip_gen: v5e
topology: v5e:2x2
jax: 0.10.0
libtpu: 0.0.40
codegen_flags: <defaults>
</compile_context>

<pallas_src>
import jax
import jax.numpy as jnp
from jax.experimental import pallas as pl
from jax.experimental.pallas import tpu as pltpu


# --------------------------------------------------------------------------- #
# Hardware-aware sizing
# --------------------------------------------------------------------------- #
def _vmem_capacity_bytes():
    """Physical per-core VMEM, with a conservative (v7x-class) fallback."""
    try:
        info = pltpu.get_tpu_info()
        for attr in ("vmem_capacity_bytes", "vmem_bytes", "vmem_size_bytes"):
            v = getattr(info, attr, None)
            if v:
                return int(v)
    except Exception:
        pass
    return 64 * 1024 * 1024


def _hw_budgets():
    cap = _vmem_capacity_bytes()
    if cap <= 64 * 1024 * 1024:
        # v7x-class: 64 MiB VMEM per TensorCore -> keep headroom for scratch.
        return dict(vmem_limit=40 * 1024 * 1024, tile_bytes=3 * 1024 * 1024)
    # v5e / v6e: 128 MiB VMEM -> bigger tiles, bigger scoped budget.
    return dict(vmem_limit=64 * 1024 * 1024, tile_bytes=6 * 1024 * 1024)


def _pick_tile_l(L, c, itemsize, target_tile_bytes):
    """Spatial tile TL (multiple of 128, or full L), sized by a byte target.

    Both kernels are pure HBM-bandwidth kernels, so the only goal is tiles in
    the multi-MiB range (measured ~85%+ of HBM roofline), preferring a TL that
    divides L so no masking is needed.
    """
    byte_cap = max(128, (target_tile_bytes // (c * itemsize)) // 128 * 128)
    if L <= byte_cap:
        return L                        # whole row in one (full-dim) tile
    for tl in range(byte_cap, 127, -128):
        if L % tl == 0:
            return tl                   # evenly dividing tile -> no masking
    return byte_cap                     # remainder handled by masking


# --------------------------------------------------------------------------- #
# Fused single-call kernel (whole x resident in VMEM)
# --------------------------------------------------------------------------- #
def _make_fused_kernel(L, batch, eps):
    inv_L = 1.0 / L
    # TODO(synk): h*w == 1 gives std = 0 here; PyTorch's unbiased std is NaN.
    inv_Lm1 = 1.0 / max(L - 1, 1)
    inv_b = 1.0 / batch

    def kernel(x_ref, w_ref, gamma_ref, beta_ref, o_ref):
        x = x_ref[...].astype(jnp.float32)                          # (b, c, L)
        # per-(b, c) spatial mean / unbiased std (centered two-pass, f32)
        mean = jnp.sum(x, axis=-1, keepdims=True) * inv_L           # (b, c, 1)
        dev = x - mean
        var = jnp.sum(dev * dev, axis=-1, keepdims=True) * inv_Lm1
        std = jnp.sqrt(var)
        # depthwise Conv1d(k=2, groups=c, no bias): z_c = w0*mean + w1*std
        wgt = w_ref[...]                                            # (c, 2)
        z = wgt[None, :, 0:1] * mean + wgt[None, :, 1:2] * std      # (b, c, 1)
        # BatchNorm1d training mode: batch stats over b (biased var) + affine
        mu = jnp.sum(z, axis=0, keepdims=True) * inv_b              # (1, c, 1)
        dz = z - mu
        bvar = jnp.sum(dz * dz, axis=0, keepdims=True) * inv_b
        g = jax.nn.sigmoid(dz * jax.lax.rsqrt(bvar + eps)
                           * gamma_ref[...] + beta_ref[...])        # (b, c, 1)
        # gate multiply in the input's native dtype (bf16 stays bf16)
        o_ref[...] = x_ref[...] * g.astype(o_ref.dtype)

    return kernel


# --------------------------------------------------------------------------- #
# Tiled path kernels
# --------------------------------------------------------------------------- #
def _make_stats_conv_kernel(L, TL, need_mask):
    # TODO(synk): h*w == 1 gives std = 0 here; PyTorch's unbiased std is NaN.
    inv_Lm1 = 1.0 / max(L - 1, 1)

    def kernel(x_ref, w_ref, z_ref, mean_ref, m2_ref):
        # x_ref: (1, c, TL)   w_ref: (c, 2)   z_ref: (1, 1, c)
        # mean_ref / m2_ref: (c, 1) f32 running stats, persist across L tiles.
        j = pl.program_id(1)

        @pl.when(j == 0)
        def _():
            mean_ref[...] = jnp.zeros_like(mean_ref)
            m2_ref[...] = jnp.zeros_like(m2_ref)

        xb = x_ref[0].astype(jnp.float32)                           # (c, TL)
        if need_mask:                                               # static flag
            col = jax.lax.broadcasted_iota(jnp.int32, xb.shape, 1) + j * TL
            valid = col < L
            n_b = jnp.minimum(TL, L - j * TL).astype(jnp.float32)
            xs = jnp.sum(jnp.where(valid, xb, 0.0), axis=-1, keepdims=True)
        else:
            n_b = float(TL)
            xs = jnp.sum(xb, axis=-1, keepdims=True)

        # Chan's parallel-variance combine: numerically stable one-pass stats.
        mean_b = xs / n_b                                           # (c, 1)
        dev = xb - mean_b
        if need_mask:
            dev = jnp.where(valid, dev, 0.0)
        m2_b = jnp.sum(dev * dev, axis=-1, keepdims=True)

        n_a = (j * TL).astype(jnp.float32)                          # prior count
        n_ab = n_a + n_b
        delta = mean_b - mean_ref[...]
        m2_ref[...] = m2_ref[...] + m2_b + delta * delta * (n_a * n_b / n_ab)
        mean_ref[...] = mean_ref[...] + delta * (n_b / n_ab)

        @pl.when(j == pl.num_programs(1) - 1)
        def _():
            mean = mean_ref[...]                                    # (c, 1)
            std = jnp.sqrt(m2_ref[...] * inv_Lm1)                   # unbiased
            wgt = w_ref[...]                                        # (c, 2)
            zc = wgt[:, 0:1] * mean + wgt[:, 1:2] * std             # (c, 1)
            z_ref[...] = zc[:, 0][None, None, :]                    # lane-dense

    return kernel


def _gate_kernel(x_ref, g_ref, o_ref):
    # x_ref: (1, c, TL)   g_ref: (1, c, 1) already-sigmoided gate (f32)
    # Pure load-multiply-store, in the input's native dtype.
    o_ref[...] = x_ref[...] * g_ref[...].astype(o_ref.dtype)


# --------------------------------------------------------------------------- #
# Forward
# --------------------------------------------------------------------------- #
def style_module_forward(x, cfc_w, bn_gamma, bn_beta, eps=1e-5,
                         force_tiled=False, tile_l=None):
    b, c, h, w = x.shape
    L = h * w
    xf = x.reshape(b, c, L)

    budgets = _hw_budgets()
    vmem_limit = budgets["vmem_limit"]

    # ---- fused path: whole x resident in VMEM (2x |x| HBM traffic) ---------
    # Working set ~ x_in + out + a couple of f32 temporaries; require ~5x the
    # f32 size of x to fit the generation-gated scoped budget.
    if (not force_tiled) and 5 * b * c * L * 4 <= vmem_limit:
        out = pl.pallas_call(
            _make_fused_kernel(L, b, eps),
            out_shape=jax.ShapeDtypeStruct((b, c, L), x.dtype),
            grid=(1,),
            in_specs=[
                pl.BlockSpec((b, c, L), lambda i: (0, 0, 0)),
                pl.BlockSpec((c, 2), lambda i: (0, 0)),
                pl.BlockSpec((1, c, 1), lambda i: (0, 0, 0)),
                pl.BlockSpec((1, c, 1), lambda i: (0, 0, 0)),
            ],
            out_specs=pl.BlockSpec((b, c, L), lambda i: (0, 0, 0)),
            compiler_params=pltpu.CompilerParams(
                dimension_semantics=("arbitrary",),
                vmem_limit_bytes=vmem_limit),
        )(xf, cfc_w, bn_gamma.reshape(1, c, 1), bn_beta.reshape(1, c, 1))
        return out.reshape(b, c, h, w)

    # ---- tiled two-call path ------------------------------------------------
    itemsize = x.dtype.itemsize
    TL = int(tile_l) if tile_l is not None else _pick_tile_l(
        L, c, itemsize, budgets["tile_bytes"])
    nL = pl.cdiv(L, TL)
    need_mask = (L % TL) != 0

    cparams_reduce = pltpu.CompilerParams(
        dimension_semantics=("parallel", "arbitrary"),
        vmem_limit_bytes=vmem_limit)
    cparams_parallel = pltpu.CompilerParams(
        dimension_semantics=("parallel", "parallel"),
        vmem_limit_bytes=vmem_limit)

    # Kernel 1: streaming spatial stats (Chan combine) + depthwise k=2 conv.
    # TODO(synk): on v7x with b == 1 the single 'parallel' axis leaves one
    # TensorCore idle; splitting the L reduction across cores (partial stats
    # combined in the glue) would recover it.
    z = pl.pallas_call(
        _make_stats_conv_kernel(L, TL, need_mask),
        out_shape=jax.ShapeDtypeStruct((b, 1, c), jnp.float32),
        grid=(b, nL),
        in_specs=[
            pl.BlockSpec((1, c, TL), lambda i, j: (i, 0, j)),
            pl.BlockSpec((c, 2), lambda i, j: (0, 0)),    # revisited: DMA'd once
        ],
        out_specs=pl.BlockSpec((1, 1, c), lambda i, j: (i, 0, 0)),
        scratch_shapes=[pltpu.VMEM((c, 1), jnp.float32),
                        pltpu.VMEM((c, 1), jnp.float32)],
        compiler_params=cparams_reduce,
    )(xf, cfc_w)

    # BatchNorm1d training mode (batch stats over b, biased var) + affine +
    # sigmoid, all on the tiny (b, c) style vector -> cheap XLA glue.  Doing
    # the sigmoid here keeps kernel 2 a pure load-multiply-store.
    z2 = z[:, 0, :]                                               # (b, c)
    mu = jnp.mean(z2, axis=0)
    var = jnp.mean((z2 - mu[None, :]) ** 2, axis=0)               # biased
    g = jax.nn.sigmoid((z2 - mu[None, :]) * jax.lax.rsqrt(var + eps)
                       * bn_gamma[None, :] + bn_beta[None, :])
    g = g.astype(jnp.float32)[:, :, None]                         # (b, c, 1)

    # Kernel 2: broadcast gate multiply over lane-dense L tiles.
    # NOTE: if x is donated/dead after this op, input_output_aliases={0: 0}
    # would reuse x's HBM buffer; not done here because the demo re-reads x.
    out = pl.pallas_call(
        _gate_kernel,
        out_shape=jax.ShapeDtypeStruct((b, c, L), x.dtype),
        grid=(b, nL),
        in_specs=[
            pl.BlockSpec((1, c, TL), lambda i, j: (i, 0, j)),
            pl.BlockSpec((1, c, 1), lambda i, j: (i, 0, 0)),      # revisited per b
        ],
        out_specs=pl.BlockSpec((1, c, TL), lambda i, j: (i, 0, j)),
        compiler_params=cparams_parallel,
    )(xf, g)

    return out.reshape(b, c, h, w)


# --------------------------------------------------------------------------- #
# Pure-JAX reference (mirrors the PyTorch forward, training-mode BN)
# --------------------------------------------------------------------------- #
def _reference_forward(x, cfc_w, bn_gamma, bn_beta, eps=1e-5):
    b, c, h, w = x.shape
    xf = x.reshape(b, c, -1)
    mean = xf.mean(-1)                                            # (b, c)
    std = jnp.sqrt(((xf - mean[:, :, None]) ** 2).sum(-1) / (h * w - 1))
    z = cfc_w[None, :, 0] * mean + cfc_w[None, :, 1] * std        # (b, c)
    mu = z.mean(0, keepdims=True)
    var = ((z - mu) ** 2).mean(0, keepdims=True)
    z_bn = (z - mu) * jax.lax.rsqrt(var + eps) * bn_gamma[None, :] + bn_beta[None, :]
    g = jax.nn.sigmoid(z_bn)
    return x * g[:, :, None, None]


if __name__ == "__main__":
    key = jax.random.PRNGKey(0)
    kx, kw = jax.random.split(key)

    # Small but exercises both paths: L = 48*48 = 2304.
    b, c, h, w = 2, 8, 48, 48
    x = jax.random.normal(kx, (b, c, h, w), dtype=jnp.float32)

    # Deterministic params (Conv1d weight (c,1,2) squeezed; BN affine defaults).
    cfc_w = 0.5 * jax.random.normal(kw, (c, 2), dtype=jnp.float32)
    bn_gamma = jnp.ones((c,), dtype=jnp.float32)
    bn_beta = jnp.zeros((c,), dtype=jnp.float32)

    fwd = jax.jit(style_module_forward, static_argnames=("force_tiled", "tile_l"))
    ref = _reference_forward(x, cfc_w, bn_gamma, bn_beta)

    # 1) default path: whole x fits VMEM -> fused single pallas_call.
    out_fused = fwd(x, cfc_w, bn_gamma, bn_beta)
    jax.block_until_ready(out_fused)
    assert out_fused.shape == x.shape
    assert jnp.allclose(out_fused, ref, atol=1e-4, rtol=1e-4), "fused mismatch"

    # 2) tiled two-kernel path with multi-tile streaming (TL=768 -> 3 L tiles).
    out_tiled = fwd(x, cfc_w, bn_gamma, bn_beta, force_tiled=True, tile_l=768)
    jax.block_until_ready(out_tiled)
    assert jnp.allclose(out_tiled, ref, atol=1e-4, rtol=1e-4), "tiled mismatch"

    # 3) bf16 input through the tiled path (native-dtype gate multiply).
    x_bf16 = x.astype(jnp.bfloat16)
    ref_bf16 = _reference_forward(x_bf16.astype(jnp.float32),
                                  cfc_w, bn_gamma, bn_beta)
    out_bf16 = fwd(x_bf16, cfc_w, bn_gamma, bn_beta,
                   force_tiled=True, tile_l=768)
    jax.block_until_ready(out_bf16)
    assert jnp.allclose(out_bf16.astype(jnp.float32), ref_bf16,
                        atol=3e-2, rtol=3e-2), "bf16 mismatch"

    print("KERNEL_OK")
</pallas_src>

<mosaic_0001>
module attributes {stable_mosaic.version = 11 : i64} {
  func.func @kernel(%arg0: i32, %arg1: memref<2x8x2304xf32, #tpu.memory_space<vmem>>, %arg2: memref<8x2xf32, #tpu.memory_space<vmem>>, %arg3: memref<1x8x1xf32, #tpu.memory_space<vmem>>, %arg4: memref<1x8x1xf32, #tpu.memory_space<vmem>>, %arg5: memref<2x8x2304xf32, #tpu.memory_space<vmem>>) attributes {dimension_semantics = [#tpu.dimension_semantics<arbitrary>], iteration_bounds = array<i64: 1>, scalar_prefetch = 0 : i64, scratch_operands = 0 : i64, tpu.core_type = #tpu.core_type<tc>, window_params = [{pipeline_mode = #tpu.pipeline_mode<synchronous>, transform_indices = @transform_0, window_bounds = array<i64: 2, 8, 2304>}, {pipeline_mode = #tpu.pipeline_mode<synchronous>, transform_indices = @transform_1, window_bounds = array<i64: 8, 2>}, {pipeline_mode = #tpu.pipeline_mode<synchronous>, transform_indices = @transform_2, window_bounds = array<i64: 1, 8, 1>}, {pipeline_mode = #tpu.pipeline_mode<synchronous>, transform_indices = @transform_3, window_bounds = array<i64: 1, 8, 1>}, {pipeline_mode = #tpu.pipeline_mode<synchronous>, transform_indices = @transform_4, window_bounds = array<i64: 2, 8, 2304>}]} {
    %c0 = arith.constant 0 : index
    %c0_0 = arith.constant 0 : index
    %c0_1 = arith.constant 0 : index
    %0 = vector.load %arg1[%c0, %c0_0, %c0_1] : memref<2x8x2304xf32, #tpu.memory_space<vmem>>, vector<2x8x2304xf32>
    %cst = arith.constant dense<0.000000e+00> : vector<2x8xf32>
    %1 = vector.multi_reduction <add>, %0, %cst [2] : vector<2x8x2304xf32> to vector<2x8xf32>
    %2 = vector.shape_cast %1 : vector<2x8xf32> to vector<2x8x1xf32>
    %cst_2 = arith.constant 4.34027781E-4 : f32
    %3 = vector.broadcast %cst_2 : f32 to vector<2x8x1xf32>
    %4 = arith.mulf %2, %3 : vector<2x8x1xf32>
    %5 = vector.broadcast %4 : vector<2x8x1xf32> to vector<2x8x2304xf32>
    %6 = arith.subf %0, %5 : vector<2x8x2304xf32>
    %7 = arith.mulf %6, %6 : vector<2x8x2304xf32>
    %cst_3 = arith.constant dense<0.000000e+00> : vector<2x8xf32>
    %8 = vector.multi_reduction <add>, %7, %cst_3 [2] : vector<2x8x2304xf32> to vector<2x8xf32>
    %9 = vector.shape_cast %8 : vector<2x8xf32> to vector<2x8x1xf32>
    %cst_4 = arith.constant 4.34216228E-4 : f32
    %10 = vector.broadcast %cst_4 : f32 to vector<2x8x1xf32>
    %11 = arith.mulf %9, %10 : vector<2x8x1xf32>
    %12 = math.sqrt %11 : vector<2x8x1xf32>
    %c0_5 = arith.constant 0 : index
    %c0_6 = arith.constant 0 : index
    %13 = vector.load %arg2[%c0_5, %c0_6] : memref<8x2xf32, #tpu.memory_space<vmem>>, vector<8x2xf32>
    %14 = vector.extract_strided_slice %13 {offsets = [0, 0], sizes = [8, 1], strides = [1, 1]} : vector<8x2xf32> to vector<8x1xf32>
    %15 = vector.shape_cast %14 : vector<8x1xf32> to vector<1x8x1xf32>
    %16 = vector.broadcast %15 : vector<1x8x1xf32> to vector<2x8x1xf32>
    %17 = arith.mulf %16, %4 : vector<2x8x1xf32>
    %18 = vector.extract_strided_slice %13 {offsets = [0, 1], sizes = [8, 1], strides = [1, 1]} : vector<8x2xf32> to vector<8x1xf32>
    %19 = vector.shape_cast %18 : vector<8x1xf32> to vector<1x8x1xf32>
    %20 = vector.broadcast %19 : vector<1x8x1xf32> to vector<2x8x1xf32>
    %21 = arith.mulf %20, %12 : vector<2x8x1xf32>
    %22 = arith.addf %17, %21 : vector<2x8x1xf32>
    %cst_7 = arith.constant dense<0.000000e+00> : vector<8x1xf32>
    %23 = vector.multi_reduction <add>, %22, %cst_7 [0] : vector<2x8x1xf32> to vector<8x1xf32>
    %24 = vector.shape_cast %23 : vector<8x1xf32> to vector<1x8x1xf32>
    %cst_8 = arith.constant 5.000000e-01 : f32
    %25 = vector.broadcast %cst_8 : f32 to vector<1x8x1xf32>
    %26 = arith.mulf %24, %25 : vector<1x8x1xf32>
    %27 = vector.broadcast %26 : vector<1x8x1xf32> to vector<2x8x1xf32>
    %28 = arith.subf %22, %27 : vector<2x8x1xf32>
    %29 = arith.mulf %28, %28 : vector<2x8x1xf32>
    %cst_9 = arith.constant dense<0.000000e+00> : vector<8x1xf32>
    %30 = vector.multi_reduction <add>, %29, %cst_9 [0] : vector<2x8x1xf32> to vector<8x1xf32>
    %31 = vector.shape_cast %30 : vector<8x1xf32> to vector<1x8x1xf32>
    %cst_10 = arith.constant 5.000000e-01 : f32
    %32 = vector.broadcast %cst_10 : f32 to vector<1x8x1xf32>
    %33 = arith.mulf %31, %32 : vector<1x8x1xf32>
    %cst_11 = arith.constant 9.99999974E-6 : f32
    %34 = vector.broadcast %cst_11 : f32 to vector<1x8x1xf32>
    %35 = arith.addf %33, %34 : vector<1x8x1xf32>
    %36 = math.rsqrt %35 : vector<1x8x1xf32>
    %37 = vector.broadcast %36 : vector<1x8x1xf32> to vector<2x8x1xf32>
    %38 = arith.mulf %28, %37 : vector<2x8x1xf32>
    %c0_12 = arith.constant 0 : index
    %c0_13 = arith.constant 0 : index
    %c0_14 = arith.constant 0 : index
    %39 = vector.load %arg3[%c0_12, %c0_13, %c0_14] : memref<1x8x1xf32, #tpu.memory_space<vmem>>, vector<1x8x1xf32>
    %40 = vector.broadcast %39 : vector<1x8x1xf32> to vector<2x8x1xf32>
    %41 = arith.mulf %38, %40 : vector<2x8x1xf32>
    %c0_15 = arith.constant 0 : index
    %c0_16 = arith.constant 0 : index
    %c0_17 = arith.constant 0 : index
    %42 = vector.load %arg4[%c0_15, %c0_16, %c0_17] : memref<1x8x1xf32, #tpu.memory_space<vmem>>, vector<1x8x1xf32>
    %43 = vector.broadcast %42 : vector<1x8x1xf32> to vector<2x8x1xf32>
    %44 = arith.addf %41, %43 : vector<2x8x1xf32>
    %45 = arith.negf %44 : vector<2x8x1xf32>
    %46 = math.exp %45 : vector<2x8x1xf32>
    %cst_18 = arith.constant 1.000000e+00 : f32
    %47 = vector.broadcast %cst_18 : f32 to vector<2x8x1xf32>
    %48 = arith.addf %47, %46 : vector<2x8x1xf32>
    %49 = arith.divf %47, %48 : vector<2x8x1xf32>
    %c0_19 = arith.constant 0 : index
    %c0_20 = arith.constant 0 : index
    %c0_21 = arith.constant 0 : index
    %50 = vector.load %arg1[%c0_19, %c0_20, %c0_21] : memref<2x8x2304xf32, #tpu.memory_space<vmem>>, vector<2x8x2304xf32>
    %51 = vector.broadcast %49 : vector<2x8x1xf32> to vector<2x8x2304xf32>
    %52 = arith.mulf %50, %51 : vector<2x8x2304xf32>
    %c0_22 = arith.constant 0 : index
    %c0_23 = arith.constant 0 : index
    %c0_24 = arith.constant 0 : index
    %53 = vector.load %arg5[%c0_22, %c0_23, %c0_24] : memref<2x8x2304xf32, #tpu.memory_space<vmem>>, vector<2x8x2304xf32>
    tpu.vector_store %arg5[%c0_22, %c0_23, %c0_24], %52 {strides = array<i32>} : memref<2x8x2304xf32, #tpu.memory_space<vmem>>, vector<2x8x2304xf32>,
    return
  }
  func.func @transform_0(%arg0: i32) -> (i32, i32, i32) {
    %c0_i32 = arith.constant 0 : i32
    %c0_i32_0 = arith.constant 0 : i32
    %c0_i32_1 = arith.constant 0 : i32
    %c0_i32_2 = arith.constant 0 : i32
    return %c0_i32, %c0_i32_0, %c0_i32_1 : i32, i32, i32
  }
  func.func @transform_1(%arg0: i32) -> (i32, i32) {
    %c0_i32 = arith.constant 0 : i32
    %c0_i32_0 = arith.constant 0 : i32
    %c0_i32_1 = arith.constant 0 : i32
    return %c0_i32, %c0_i32_0 : i32, i32
  }
  func.func @transform_2(%arg0: i32) -> (i32, i32, i32) {
    %c0_i32 = arith.constant 0 : i32
    %c0_i32_0 = arith.constant 0 : i32
    %c0_i32_1 = arith.constant 0 : i32
    %c0_i32_2 = arith.constant 0 : i32
    return %c0_i32, %c0_i32_0, %c0_i32_1 : i32, i32, i32
  }
  func.func @transform_3(%arg0: i32) -> (i32, i32, i32) {
    %c0_i32 = arith.constant 0 : i32
    %c0_i32_0 = arith.constant 0 : i32
    %c0_i32_1 = arith.constant 0 : i32
    %c0_i32_2 = arith.constant 0 : i32
    return %c0_i32, %c0_i32_0, %c0_i32_1 : i32, i32, i32
  }
  func.func @transform_4(%arg0: i32) -> (i32, i32, i32) {
    %c0_i32 = arith.constant 0 : i32
    %c0_i32_0 = arith.constant 0 : i32
    %c0_i32_1 = arith.constant 0 : i32
    %c0_i32_2 = arith.constant 0 : i32
    return %c0_i32, %c0_i32_0, %c0_i32_1 : i32, i32, i32
  }
}

</mosaic_0001>

<bundles_post_ra>
// kernel: style_module_forward.1
= control target key start
LH: loop header
LB: loop body
LE: loop exit
PB: predicated region body
PF: predicated region fallthrough
CT: control target
= control target key end

     0   :  { %s420_s10 = smov 127   ;;  %vm244_vm4 = vcmask 7168   ;;  %s914_s0 = inlined_call_operand.vmem [shape: f32[2,8,2304], index: 0, kind: input, shape index: {}]   ;;  %s915_s1 = inlined_call_operand.vmem [shape: f32[8,2], index: 1, kind: input, shape index: {}]   ;;  %s916_s2 = inlined_call_operand.vmem [shape: f32[1,8,1], index: 2, kind: input, shape index: {}]   ;;  %s917_s3 = inlined_call_operand.vmem [shape: f32[1,8,1], index: 3, kind: input, shape index: {}]   ;;  %s918_s4 = inlined_call_operand.vmem [shape: f32[2,8,2304], index: 4, kind: output, shape index: {}]  }
   0x1   :  { %v450_v0 = vld [vmem:[%s914_s0] sm:$0xff]  ;;  %v455_v1 = vld [vmem:[%s914_s0 + $0x8] sm:$0xff]  ;;  %v460_v2 = vld [vmem:[%s914_s0 + $0x10] sm:$0xff] }
   0x2   :  { %v53_v3 = vadd.f32 %v455_v1, %v450_v0  ;;  %v467_v4 = vld [vmem:[%s914_s0 + $0x18] sm:$0xff]  ;;  %v473_v6 = vld [vmem:[%s914_s0 + $0x20] sm:$0xff]  ;;  %v478_v7 = vld [vmem:[%s914_s0 + $0x28] sm:$0xff] }
   0x3   :  { %v484_v9 = vld [vmem:[%s914_s0 + $0x90] sm:$0xff]  ;;  %v489_v10 = vld [vmem:[%s914_s0 + $0x98] sm:$0xff]  ;;  %v494_v11 = vld [vmem:[%s914_s0 + $0xa0] sm:$0xff] }
   0x4   :  { %v54_v5 = vadd.f32 %v53_v3, %v460_v2  ;;  %v72_v13 = vadd.f32 %v489_v10, %v484_v9  ;;  %v502_v14 = vld [vmem:[%s914_s0 + $0x30] sm:$0xff]  ;;  %v507_v15 = vld [vmem:[%s914_s0 + $0xa8] sm:$0xff]  ;;  %v514_v18 = vld [vmem:[%s914_s0 + $0x38] sm:$0xff] }
   0x5   :  { %v519_v19 = vld [vmem:[%s914_s0 + $0xb0] sm:$0xff]  ;;  %v526_v22 = vld [vmem:[%s914_s0 + $0x40] sm:$0xff]  ;;  %v531_v23 = vld [vmem:[%s914_s0 + $0xb8] sm:$0xff] }
   0x6   :  { %v55_v8 = vadd.f32 %v54_v5, %v467_v4  ;;  %v73_v17 = vadd.f32 %v72_v13, %v494_v11  ;;  %v538_v26 = vld [vmem:[%s914_s0 + $0x48] sm:$0xff]  ;;  %v543_v27 = vld [vmem:[%s914_s0 + $0xc0] sm:$0xff]  ;;  %v550_v30 = vld [vmem:[%s914_s0 + $0x50] sm:$0xff] }
   0x7   :  { %v555_v31 = vld [vmem:[%s914_s0 + $0xc8] sm:$0xff]  ;;  %v562_v34 = vld [vmem:[%s914_s0 + $0x58] sm:$0xff]  ;;  %v567_v35 = vld [vmem:[%s914_s0 + $0xd0] sm:$0xff] }
   0x8   :  { %v56_v12 = vadd.f32 %v55_v8, %v473_v6  ;;  %v74_v21 = vadd.f32 %v73_v17, %v507_v15  ;;  %v574_v38 = vld [vmem:[%s914_s0 + $0x60] sm:$0xff]  ;;  %v579_v39 = vld [vmem:[%s914_s0 + $0xd8] sm:$0xff]  ;;  %v586_v42 = vld [vmem:[%s914_s0 + $0x68] sm:$0xff] }
   0x9   :  { %v591_v43 = vld [vmem:[%s914_s0 + $0xe0] sm:$0xff]  ;;  %v598_v46 = vld [vmem:[%s914_s0 + $0x70] sm:$0xff]  ;;  %v603_v47 = vld [vmem:[%s914_s0 + $0xe8] sm:$0xff] }
   0xa   :  { %v57_v16 = vadd.f32 %v56_v12, %v478_v7  ;;  %v75_v25 = vadd.f32 %v74_v21, %v519_v19  ;;  %v610_v50 = vld [vmem:[%s914_s0 + $0x78] sm:$0xff]  ;;  %v615_v51 = vld [vmem:[%s914_s0 + $0xf0] sm:$0xff]  ;;  %v622_v54 = vld [vmem:[%s914_s0 + $0x80] sm:$0xff] }
   0xb   :  { %v627_v55 = vld [vmem:[%s914_s0 + $0xf8] sm:$0xff]  ;;  %v634_v58 = vld [vmem:[%s914_s0 + $0x88] sm:$0xff]  ;;  %v639_v59 = vld [vmem:[%s914_s0 + $0x100] sm:$0xff] }
   0xc   :  { %v58_v20 = vadd.f32 %v57_v16, %v502_v14  ;;  %v76_v29 = vadd.f32 %v75_v25, %v531_v23  ;;  %v646_v62 = vld [vmem:[%s914_s0 + $0x108] sm:$0xff]  ;;  %v653_v5 = vld [vmem:[%s914_s0 + $0x110] sm:$0xff]  ;;  %v659_v12 = vld [vmem:[%s914_s0 + $0x118] sm:$0xff] }
   0xe   :  { %v59_v24 = vadd.f32 %v58_v20, %v514_v18  ;;  %v77_v33 = vadd.f32 %v76_v29, %v543_v27 }
  0x10   :  { %v60_v28 = vadd.f32 %v59_v24, %v526_v22  ;;  %v78_v37 = vadd.f32 %v77_v33, %v555_v31 }
  0x12   :  { %v61_v32 = vadd.f32 %v60_v28, %v538_v26  ;;  %v79_v41 = vadd.f32 %v78_v37, %v567_v35 }
  0x14   :  { %v62_v36 = vadd.f32 %v61_v32, %v550_v30  ;;  %v80_v45 = vadd.f32 %v79_v41, %v579_v39 }
  0x16   :  { %v63_v40 = vadd.f32 %v62_v36, %v562_v34  ;;  %v81_v49 = vadd.f32 %v80_v45, %v591_v43 }
  0x18   :  { %v64_v44 = vadd.f32 %v63_v40, %v574_v38  ;;  %v82_v53 = vadd.f32 %v81_v49, %v603_v47 }
  0x1a   :  { %v65_v48 = vadd.f32 %v64_v44, %v586_v42  ;;  %v83_v57 = vadd.f32 %v82_v53, %v615_v51 }
  0x1c   :  { %v66_v52 = vadd.f32 %v65_v48, %v598_v46  ;;  %v84_v61 = vadd.f32 %v83_v57, %v627_v55 }
  0x1e   :  { %v67_v56 = vadd.f32 %v66_v52, %v610_v50  ;;  %v85_v3 = vadd.f32 %v84_v61, %v639_v59 }
  0x20   :  { %v68_v60 = vadd.f32 %v67_v56, %v622_v54  ;;  %v86_v8 = vadd.f32 %v85_v3, %v646_v62 }
  0x22   :  { %v69_v63 = vadd.f32 %v68_v60, %v634_v58  ;;  %v87_v13 = vadd.f32 %v86_v8, %v653_v5 }
  0x24   :  { %70 = vadd.xlane.f32.xlu0 %v69_v63  ;;  %v88_v16 = vadd.f32 %v87_v13, %v659_v12 }
  0x2c   :  { %89 = vadd.xlane.f32.xlu0 %v88_v16 }
  0x97   :  { %v71_v17 = vpop.xlane.xlu0 %70 }
  0x98   :  { %v663_v20 = vmul.f32 0.00043402778, %v71_v17 }
  0x9a   :  { %v93_v21 = vsub.f32 %v450_v0, %v663_v20  ;;  %v94_v24 = vsub.f32 %v455_v1, %v663_v20  ;;  %v95_v28 = vsub.f32 %v460_v2, %v663_v20  ;;  %v96_v36 = vsub.f32 %v467_v4, %v663_v20 }
  0x9b   :  { %v97_v37 = vsub.f32 %v473_v6, %v663_v20  ;;  %v98_v44 = vsub.f32 %v478_v7, %v663_v20  ;;  %v99_v53 = vsub.f32 %v502_v14, %v663_v20  ;;  %v100_v60 = vsub.f32 %v514_v18, %v663_v20 }
  0x9c   :  { %v129_v29 = vmul.f32 %v93_v21, %v93_v21  ;;  %v130_v32 = vmul.f32 %v94_v24, %v94_v24  ;;  %v131_v40 = vmul.f32 %v95_v28, %v95_v28  ;;  %v132_v45 = vmul.f32 %v96_v36, %v96_v36 }
  0x9d   :  { %v133_v56 = vmul.f32 %v97_v37, %v97_v37  ;;  %v134_v61 = vmul.f32 %v98_v44, %v98_v44  ;;  %v101_v16 = vsub.f32 %v526_v22, %v663_v20  ;;  %v135_v17 = vmul.f32 %v99_v53, %v99_v53 }
  0x9e   :  { %v165_v41 = vadd.f32 %v130_v32, %v129_v29  ;;  %v136_v28 = vmul.f32 %v100_v60, %v100_v60 }
  0x9f   :  { %v90_v25 = vpop.xlane.xlu0 %89 }
  0xa0   :  { %v671_v33 = vmul.f32 0.00043402778, %v90_v25  ;;  %v166_v48 = vadd.f32 %v165_v41, %v131_v40  ;;  %v102_v25 = vsub.f32 %v538_v26, %v663_v20  ;;  %v103_v40 = vsub.f32 %v550_v30, %v663_v20 }
  0xa1   :  { %v137_v41 = vmul.f32 %v101_v16, %v101_v16 }
  0xa2   :  { %v111_v49 = vsub.f32 %v484_v9, %v671_v33  ;;  %v112_v52 = vsub.f32 %v489_v10, %v671_v33  ;;  %v167_v57 = vadd.f32 %v166_v48, %v132_v45  ;;  %v113_v3 = vsub.f32 %v494_v11, %v671_v33 }
  0xa3   :  { %v114_v24 = vsub.f32 %v507_v15, %v671_v33  ;;  %v115_v32 = vsub.f32 %v519_v19, %v671_v33  ;;  %v116_v45 = vsub.f32 %v531_v23, %v671_v33  ;;  %v138_v53 = vmul.f32 %v102_v25, %v102_v25 }
  0xa4   :  { %v168_v63 = vadd.f32 %v167_v57, %v133_v56  ;;  %v147_v8 = vmul.f32 %v111_v49, %v111_v49  ;;  %v148_v13 = vmul.f32 %v112_v52, %v112_v52  ;;  %v149_v36 = vmul.f32 %v113_v3, %v113_v3 }
  0xa5   :  { %v150_v48 = vmul.f32 %v114_v24, %v114_v24  ;;  %v104_v52 = vsub.f32 %v562_v34, %v663_v20  ;;  %v117_v57 = vsub.f32 %v543_v27, %v671_v33  ;;  %v151_v60 = vmul.f32 %v115_v32, %v115_v32 }
  0xa6   :  { %v169_v21 = vadd.f32 %v168_v63, %v134_v61  ;;  %v184_v37 = vadd.f32 %v148_v13, %v147_v8  ;;  %v105_v63 = vsub.f32 %v574_v38, %v663_v20  ;;  %v139_v3 = vmul.f32 %v103_v40, %v103_v40 }
  0xa7   :  { %v118_v13 = vsub.f32 %v555_v31, %v671_v33  ;;  %v152_v16 = vmul.f32 %v116_v45, %v116_v45  ;;  %v140_v24 = vmul.f32 %v104_v52, %v104_v52 }
  0xa8   :  { %v170_v29 = vadd.f32 %v169_v21, %v135_v17  ;;  %v185_v49 = vadd.f32 %v184_v37, %v149_v36  ;;  %v106_v21 = vsub.f32 %v586_v42, %v663_v20  ;;  %v107_v36 = vsub.f32 %v598_v46, %v663_v20 }
  0xa9   :  { %v141_v37 = vmul.f32 %v105_v63, %v105_v63 }
  0xaa   :  { %v171_v44 = vadd.f32 %v170_v29, %v136_v28  ;;  %v186_v61 = vadd.f32 %v185_v49, %v150_v48  ;;  %v119_v28 = vsub.f32 %v567_v35, %v671_v33  ;;  %v153_v29 = vmul.f32 %v117_v57, %v117_v57 }
  0xab   :  { %v108_v48 = vsub.f32 %v610_v50, %v663_v20  ;;  %v142_v49 = vmul.f32 %v106_v21, %v106_v21 }
  0xac   :  { %v172_v56 = vadd.f32 %v171_v44, %v137_v41  ;;  %v187_v17 = vadd.f32 %v186_v61, %v151_v60  ;;  %v120_v41 = vsub.f32 %v579_v39, %v671_v33  ;;  %v154_v44 = vmul.f32 %v118_v13, %v118_v13 }
  0xad   :  { %v109_v60 = vsub.f32 %v622_v54, %v663_v20  ;;  %v143_v61 = vmul.f32 %v107_v36, %v107_v36  ;;  %v124_v36 = vsub.f32 %v627_v55, %v671_v33 }
  0xae   :  { %v173_v8 = vadd.f32 %v172_v56, %v138_v53  ;;  %v188_v32 = vadd.f32 %v187_v17, %v152_v16  ;;  %v121_v53 = vsub.f32 %v591_v43, %v671_v33  ;;  %v155_v56 = vmul.f32 %v119_v28, %v119_v28 }
  0xaf   :  { %v110_v16 = vsub.f32 %v634_v58, %v663_v20  ;;  %v144_v17 = vmul.f32 %v108_v48, %v108_v48 }
  0xb0   :  { %v174_v25 = vadd.f32 %v173_v8, %v139_v3  ;;  %v189_v45 = vadd.f32 %v188_v32, %v153_v29  ;;  %v122_v3 = vsub.f32 %v603_v47, %v671_v33  ;;  %v156_v8 = vmul.f32 %v120_v41, %v120_v41 }
  0xb1   :  { %v145_v29 = vmul.f32 %v109_v60, %v109_v60  ;;  %v127_v60 = vsub.f32 %v653_v5, %v671_v33 }
  0xb2   :  { %v175_v40 = vadd.f32 %v174_v25, %v140_v24  ;;  %v190_v57 = vadd.f32 %v189_v45, %v154_v44  ;;  %v123_v24 = vsub.f32 %v615_v51, %v671_v33  ;;  %v157_v25 = vmul.f32 %v121_v53, %v121_v53 }
  0xb3   :  { %v146_v44 = vmul.f32 %v110_v16, %v110_v16  ;;  %v125_v45 = vsub.f32 %v639_v59, %v671_v33  ;;  %v160_v53 = vmul.f32 %v124_v36, %v124_v36  ;;  %v163_v16 = vmul.f32 %v127_v60, %v127_v60 }
  0xb4   :  { %v176_v52 = vadd.f32 %v175_v40, %v141_v37  ;;  %v191_v13 = vadd.f32 %v190_v57, %v155_v56  ;;  %v158_v37 = vmul.f32 %v122_v3, %v122_v3  ;;  %v126_v56 = vsub.f32 %v646_v62, %v671_v33 }
  0xb5   :  { %v128_v3 = vsub.f32 %v659_v12, %v671_v33 }
  0xb6   :  { %v177_v63 = vadd.f32 %v176_v52, %v142_v49  ;;  %v192_v28 = vadd.f32 %v191_v13, %v156_v8  ;;  %v159_v49 = vmul.f32 %v123_v24, %v123_v24  ;;  %v162_v8 = vmul.f32 %v126_v56, %v126_v56 }
  0xb8   :  { %v178_v21 = vadd.f32 %v177_v63, %v143_v61  ;;  %v193_v40 = vadd.f32 %v192_v28, %v157_v25  ;;  %v161_v61 = vmul.f32 %v125_v45, %v125_v45 }
  0xba   :  { %v179_v32 = vadd.f32 %v178_v21, %v144_v17  ;;  %v194_v48 = vadd.f32 %v193_v40, %v158_v37  ;;  %v164_v21 = vmul.f32 %v128_v3, %v128_v3 }
  0xbc   :  { %v180_v41 = vadd.f32 %v179_v32, %v145_v29  ;;  %v195_v57 = vadd.f32 %v194_v48, %v159_v49 }
  0xbe   :  { %v181_v52 = vadd.f32 %v180_v41, %v146_v44  ;;  %v196_v63 = vadd.f32 %v195_v57, %v160_v53 }
  0xc0   :  { %182 = vadd.xlane.f32.xlu1 %v181_v52  ;;  %v197_v13 = vadd.f32 %v196_v63, %v161_v61  ;;  %v229_v63 = vld [vmem:[%s915_s1] sm:$0xff] }
  0xc2   :  { %v198_v17 = vadd.f32 %v197_v13, %v162_v8 }
  0xc4   :  { %v199_v24 = vadd.f32 %v198_v17, %v163_v16 }
  0xc6   :  { %v200_v25 = vadd.f32 %v199_v24, %v164_v21 }
  0xc8   :  { %201 = vadd.xlane.f32.xlu1 %v200_v25 }
 0x133   :  { %v183_v28 = vpop.xlane.xlu1 %182 }
 0x134   :  { %v203_v29 = vmul.f32 0.00043421623, %v183_v28 }
 0x136   :  { %406 = vrsqrt.f32 %v203_v29  ;;  %vm212_vm0 = vcmp.eq.f32.partialorder %v203_v29, inf  ;;  %v215_v53 = vand.u32 2147483648, %v203_v29  ;;  %vm214_vm1 = vcmp.eq.f32.partialorder %v203_v29, 0.0 }
 0x13b   :  { %v202_v36 = vpop.xlane.xlu1 %201 }
 0x13c   :  { %v407_v32 = vpop.eup %406  ;;  %v204_v40 = vmul.f32 0.00043421623, %v202_v36 }
 0x13d   :  { %v206_v37 = vmul.f32 %v407_v32, %v203_v29 }
 0x13e   :  { %408 = vrsqrt.f32 %v204_v40  ;;  %vm224_vm2 = vcmp.eq.f32.partialorder %v204_v40, inf  ;;  %v227_v21 = vand.u32 2147483648, %v204_v40  ;;  %vm226_vm3 = vcmp.eq.f32.partialorder %v204_v40, 0.0 }
 0x13f   :  { %v207_v44 = vmul.f32 %v407_v32, %v206_v37  ;;  %v231_v37 = vmul.f32 %v229_v63, %v671_v33 }
 0x141   :  { %v208_v41 = vmul.f32 0.5, %v207_v44 }
 0x143   :  { %v209_v45 = vsub.f32 1.5, %v208_v41 }
 0x144   :  { %v409_v48 = vpop.eup %408 }
 0x145   :  { %v210_v49 = vmul.f32 %v407_v32, %v209_v45  ;;  %v218_v56 = vmul.f32 %v409_v48, %v204_v40  ;;  %v230_v32 = vmul.f32 %v229_v63, %v663_v20  ;;  %v421_v20 = vmov 0  }
 0x146   :  { %405 = vset.pattern.permute.xlu1 %v421_v20  ;;  %404 = vset.pattern.permute.xlu0 %v421_v20 }
 0x147   :  { %v211_v52 = vmul.f32 %v210_v49, %v203_v29  ;;  %v219_v60 = vmul.f32 %v409_v48, %v218_v56 }
 0x149   :  { %v213_v57 = vsel %vm212_vm0, %v203_v29, %v211_v52  ;;  %v220_v8 = vmul.f32 0.5, %v219_v60 }
 0x14a   :  { %v216_v61 = vsel %vm214_vm1, %v215_v53, %v213_v57 }
 0x14b   :  { %v232_v3 = vmul.f32 %v229_v63, %v216_v61  ;;  %v221_v13 = vsub.f32 1.5, %v220_v8 }
 0x14d   :  { %236 = vrot.lane.b32.xlu2 %v232_v3, %s420_s10  ;;  %v222_v16 = vmul.f32 %v409_v48, %v221_v13 }
 0x14f   :  { %v223_v17 = vmul.f32 %v222_v16, %v204_v40 }
 0x151   :  { %v225_v24 = vsel %vm224_vm2, %v204_v40, %v223_v17 }
 0x152   :  { %v228_v25 = vsel %vm226_vm3, %v227_v21, %v225_v24 }
 0x153   :  { %v233_v28 = vmul.f32 %v229_v63, %v228_v25  ;;  %v270_v25 = vld [vmem:[%s916_s2] sm:$0xff] }
 0x155   :  { %238 = vrot.lane.b32.xlu2 %v233_v28, %s420_s10 }
 0x1a7   :  { %v237_v29 = vpop.permute.xlu2 %236 }
 0x1a8   :  { %v242_v36 = vadd.f32 %v237_v29, %v230_v32 }
 0x1aa   :  { %v245_v45 = vsel %vm244_vm4, %v242_v36, 0.0 }
 0x1af   :  { %v239_v44 = vpop.permute.xlu2 %238 }
 0x1b0   :  { %v243_v41 = vadd.f32 %v239_v44, %v231_v37 }
 0x1b2   :  { %v246_v49 = vsel %vm244_vm4, %v243_v41, 0.0 }
 0x1b3   :  { %v247_v48 = vadd.f32 %v246_v49, %v245_v45 }
 0x1b5   :  { %v248_v52 = vmul.f32 0.5, %v247_v48 }
 0x1b7   :  { %v249_v56 = vsub.f32 %v242_v36, %v248_v52  ;;  %v250_v53 = vsub.f32 %v243_v41, %v248_v52  ;;  %v273_v36 = vld [vmem:[%s917_s3] sm:$0xff] }
 0x1b9   :  { %v251_v57 = vmul.f32 %v249_v56, %v249_v56  ;;  %v252_v40 = vmul.f32 %v250_v53, %v250_v53 }
 0x1bb   :  { %v253_v60 = vsel %vm244_vm4, %v251_v57, 0.0  ;;  %v254_v61 = vsel %vm244_vm4, %v252_v40, 0.0 }
 0x1bc   :  { %v255_v3 = vadd.f32 %v254_v61, %v253_v60 }
 0x1be   :  { %v256_v8 = vmul.f32 0.5, %v255_v3 }
 0x1c0   :  { %v257_v13 = vadd.f32 1e-05, %v256_v8 }
 0x1c2   :  { %410 = vrsqrt.f32 %v257_v13  ;;  %vm264_vm6 = vweird.f32 %v257_v13 }
 0x1c8   :  { %v411_v33 = vpop.eup %410 }
 0x1c9   :  { %v259_v63 = vmul.f32 %v411_v33, %v257_v13  ;;  %vm265_vm5 = vweird.f32 %v411_v33 }
 0x1ca   :  { %vm266_vm7 = vmor %vm264_vm6, %vm265_vm5 }
 0x1cb   :  { %v260_v16 = vmul.f32 %v411_v33, %v259_v63 }
 0x1cd   :  { %v261_v17 = vmul.f32 0.5, %v260_v16 }
 0x1cf   :  { %v262_v21 = vsub.f32 1.5, %v261_v17 }
 0x1d1   :  { %v263_v24 = vmul.f32 %v411_v33, %v262_v21 }
 0x1d3   :  { %v267_v28 = vsel %vm266_vm7, %v411_v33, %v263_v24 }
 0x1d4   :  { %v268_v29 = vmul.f32 %v267_v28, %v249_v56  ;;  %v269_v32 = vmul.f32 %v267_v28, %v250_v53 }
 0x1d6   :  { %v271_v37 = vmul.f32 %v270_v25, %v268_v29  ;;  %v272_v44 = vmul.f32 %v270_v25, %v269_v32 }
 0x1d8   :  { %v274_v41 = vadd.f32 %v273_v36, %v271_v37  ;;  %v275_v45 = vadd.f32 %v273_v36, %v272_v44 }
 0x1da   :  { %v400_v49 = vmul.f32 -1.442695, %v274_v41  ;;  %v401_v48 = vmul.f32 -1.442695, %v275_v45 }
 0x1dc   :  { %412 = vpow2.f32 %v400_v49 }
 0x1dd   :  { %414 = vpow2.f32 %v401_v48 }
 0x1e2   :  { %v413_v52 = vpop.eup %412 }
 0x1e3   :  { %v415_v57 = vpop.eup %414  ;;  %v282_v40 = vadd.f32 1.0, %v413_v52 }
 0x1e4   :  { %v283_v60 = vadd.f32 1.0, %v415_v57 }
 0x1e5   :  { %416 = vrcp.f32 %v282_v40  ;;  %v295_v20 = vand.u32 2147483648, %v282_v40  ;;  %v293_v16 = vand.u32 2147483647, %v282_v40  ;;  %vm289_vm10 = vweird.f32 %v282_v40 }
 0x1e6   :  { %418 = vrcp.f32 %v283_v60  ;;  %v310_v33 = vand.u32 2147483648, %v283_v60  ;;  %v308_v21 = vand.u32 2147483647, %v283_v60  ;;  %vm304_vm11 = vweird.f32 %v283_v60 }
 0x1e7   :  { %v296_v28 = vor.u32 1.1754944e-38, %v295_v20  ;;  %vm294_vm14 = vcmp.eq.f32.partialorder %v293_v16, 8.507059e+37 }
 0x1e8   :  { %v311_v29 = vor.u32 1.1754944e-38, %v310_v33  ;;  %vm309_vm15 = vcmp.eq.f32.partialorder %v308_v21, 8.507059e+37 }
 0x1eb   :  { %v417_v56 = vpop.eup %416 }
 0x1ec   :  { %v419_v53 = vpop.eup %418  ;;  %v285_v61 = vmul.f32 %v417_v56, %v282_v40  ;;  %vm290_vm8 = vweird.f32 %v417_v56 }
 0x1ed   :  { %v300_v3 = vmul.f32 %v419_v53, %v283_v60  ;;  %vm305_vm9 = vweird.f32 %v419_v53  ;;  %vm291_vm12 = vmor %vm289_vm10, %vm290_vm8 }
 0x1ee   :  { %v286_v8 = vsub.f32 1.0, %v285_v61  ;;  %vm306_vm13 = vmor %vm304_vm11, %vm305_vm9 }
 0x1ef   :  { %v301_v13 = vsub.f32 1.0, %v300_v3 }
 0x1f0   :  { %v287_v63 = vmul.f32 %v417_v56, %v286_v8 }
 0x1f1   :  { %v302_v17 = vmul.f32 %v419_v53, %v301_v13 }
 0x1f2   :  { %v288_v24 = vadd.f32 %v417_v56, %v287_v63 }
 0x1f3   :  { %v303_v25 = vadd.f32 %v419_v53, %v302_v17 }
 0x1f4   :  { %v292_v32 = vsel %vm291_vm12, %v417_v56, %v288_v24 }
 0x1f5   :  { %v307_v36 = vsel %vm306_vm13, %v419_v53, %v303_v25  ;;  %v297_v37 = vsel %vm294_vm14, %v296_v28, %v292_v32 }
 0x1f6   :  { %v312_v44 = vsel %vm309_vm15, %v311_v29, %v307_v36  ;;  %316 = vperm.xlu0 %404, %v297_v37  }
 0x1f7   :  { %321 = vperm.xlu1 %405, %v312_v44  }
 0x268   :  { %v750_v41 = vpop.permute.xlu0 %316 }
 0x269   :  { %v322_v45 = vpop.permute.xlu1 %321  ;;  %v324_v49 = vmul.f32 %v750_v41, %v450_v0 }
 0x26a   :  { %v342_v48 = vmul.f32 %v322_v45, %v484_v9  ;;  %v343_v52 = vmul.f32 %v322_v45, %v489_v10  ;;  %v344_v57 = vmul.f32 %v322_v45, %v494_v11  ;;  %v345_v40 = vmul.f32 %v322_v45, %v507_v15 }
 0x26b   :  { %360 = vst [vmem:[%s918_s4] sm:$0xff] %v324_v49  ;;  %v346_v60 = vmul.f32 %v322_v45, %v519_v19  ;;  %v347_v0 = vmul.f32 %v322_v45, %v531_v23  ;;  %v348_v9 = vmul.f32 %v322_v45, %v543_v27  ;;  %v349_v10 = vmul.f32 %v322_v45, %v555_v31 }
 0x26c   :  { %378 = vst [vmem:[%s918_s4 + $0x90] sm:$0xff] %v342_v48  ;;  %v350_v11 = vmul.f32 %v322_v45, %v567_v35  ;;  %v351_v15 = vmul.f32 %v322_v45, %v579_v39  ;;  %v352_v19 = vmul.f32 %v322_v45, %v591_v43  ;;  %v353_v23 = vmul.f32 %v322_v45, %v603_v47 }
 0x26d   :  { %379 = vst [vmem:[%s918_s4 + $0x98] sm:$0xff] %v343_v52  ;;  %v354_v27 = vmul.f32 %v322_v45, %v615_v51  ;;  %v355_v31 = vmul.f32 %v322_v45, %v627_v55  ;;  %v356_v35 = vmul.f32 %v322_v45, %v639_v59  ;;  %v357_v39 = vmul.f32 %v322_v45, %v646_v62 }
 0x26e   :  { %380 = vst [vmem:[%s918_s4 + $0xa0] sm:$0xff] %v344_v57  ;;  %v358_v43 = vmul.f32 %v322_v45, %v653_v5  ;;  %v359_v47 = vmul.f32 %v322_v45, %v659_v12  ;;  %v325_v51 = vmul.f32 %v750_v41, %v455_v1  ;;  %v326_v55 = vmul.f32 %v750_v41, %v460_v2 }
 0x26f   :  { %381 = vst [vmem:[%s918_s4 + $0xa8] sm:$0xff] %v345_v40  ;;  %v327_v59 = vmul.f32 %v750_v41, %v467_v4  ;;  %v328_v1 = vmul.f32 %v750_v41, %v473_v6  ;;  %v329_v62 = vmul.f32 %v750_v41, %v478_v7  ;;  %v330_v2 = vmul.f32 %v750_v41, %v502_v14 }
 0x270   :  { %382 = vst [vmem:[%s918_s4 + $0xb0] sm:$0xff] %v346_v60  ;;  %v331_v4 = vmul.f32 %v750_v41, %v514_v18  ;;  %v332_v6 = vmul.f32 %v750_v41, %v526_v22  ;;  %v333_v7 = vmul.f32 %v750_v41, %v538_v26  ;;  %v334_v14 = vmul.f32 %v750_v41, %v550_v30 }
 0x271   :  { %383 = vst [vmem:[%s918_s4 + $0xb8] sm:$0xff] %v347_v0  ;;  %v335_v18 = vmul.f32 %v750_v41, %v562_v34  ;;  %v336_v22 = vmul.f32 %v750_v41, %v574_v38  ;;  %v337_v26 = vmul.f32 %v750_v41, %v586_v42  ;;  %v338_v30 = vmul.f32 %v750_v41, %v598_v46 }
 0x272   :  { %384 = vst [vmem:[%s918_s4 + $0xc0] sm:$0xff] %v348_v9  ;;  %v339_v34 = vmul.f32 %v750_v41, %v610_v50  ;;  %v340_v38 = vmul.f32 %v750_v41, %v622_v54  ;;  %v341_v42 = vmul.f32 %v750_v41, %v634_v58 }
 0x273   :  { %385 = vst [vmem:[%s918_s4 + $0xc8] sm:$0xff] %v349_v10 }
 0x274   :  { %386 = vst [vmem:[%s918_s4 + $0xd0] sm:$0xff] %v350_v11 }
 0x275   :  { %387 = vst [vmem:[%s918_s4 + $0xd8] sm:$0xff] %v351_v15 }
 0x276   :  { %388 = vst [vmem:[%s918_s4 + $0xe0] sm:$0xff] %v352_v19 }
 0x277   :  { %389 = vst [vmem:[%s918_s4 + $0xe8] sm:$0xff] %v353_v23 }
 0x278   :  { %390 = vst [vmem:[%s918_s4 + $0xf0] sm:$0xff] %v354_v27 }
 0x279   :  { %391 = vst [vmem:[%s918_s4 + $0xf8] sm:$0xff] %v355_v31 }
 0x27a   :  { %392 = vst [vmem:[%s918_s4 + $0x100] sm:$0xff] %v356_v35 }
 0x27b   :  { %393 = vst [vmem:[%s918_s4 + $0x108] sm:$0xff] %v357_v39 }
 0x27c   :  { %394 = vst [vmem:[%s918_s4 + $0x110] sm:$0xff] %v358_v43 }
 0x27d   :  { %395 = vst [vmem:[%s918_s4 + $0x118] sm:$0xff] %v359_v47 }
 0x27e   :  { %361 = vst [vmem:[%s918_s4 + $0x8] sm:$0xff] %v325_v51 }
 0x27f   :  { %362 = vst [vmem:[%s918_s4 + $0x10] sm:$0xff] %v326_v55 }
 0x280   :  { %363 = vst [vmem:[%s918_s4 + $0x18] sm:$0xff] %v327_v59 }
 0x281   :  { %364 = vst [vmem:[%s918_s4 + $0x20] sm:$0xff] %v328_v1 }
 0x282   :  { %365 = vst [vmem:[%s918_s4 + $0x28] sm:$0xff] %v329_v62 }
 0x283   :  { %366 = vst [vmem:[%s918_s4 + $0x30] sm:$0xff] %v330_v2 }
 0x284   :  { %367 = vst [vmem:[%s918_s4 + $0x38] sm:$0xff] %v331_v4 }
 0x285   :  { %368 = vst [vmem:[%s918_s4 + $0x40] sm:$0xff] %v332_v6 }
 0x286   :  { %369 = vst [vmem:[%s918_s4 + $0x48] sm:$0xff] %v333_v7 }
 0x287   :  { %370 = vst [vmem:[%s918_s4 + $0x50] sm:$0xff] %v334_v14 }
 0x288   :  { %371 = vst [vmem:[%s918_s4 + $0x58] sm:$0xff] %v335_v18 }
 0x289   :  { %372 = vst [vmem:[%s918_s4 + $0x60] sm:$0xff] %v336_v22 }
 0x28a   :  { %373 = vst [vmem:[%s918_s4 + $0x68] sm:$0xff] %v337_v26 }
 0x28b   :  { %374 = vst [vmem:[%s918_s4 + $0x70] sm:$0xff] %v338_v30 }
 0x28c   :  { %375 = vst [vmem:[%s918_s4 + $0x78] sm:$0xff] %v339_v34 }
 0x28d   :  { %376 = vst [vmem:[%s918_s4 + $0x80] sm:$0xff] %v340_v38 }
 0x28e   :  { %377 = vst [vmem:[%s918_s4 + $0x88] sm:$0xff] %v341_v42 }

</bundles_post_ra>
